<compile_context>
chip_gen: v6e
topology: v6e:2x2x1
jax: 0.10.0
libtpu: 0.0.40
codegen_flags: <defaults>
</compile_context>

<pallas_src>
import jax
import jax.numpy as jnp
from jax.experimental import pallas as pl
from jax.experimental.pallas import tpu as pltpu

_BLOCK = 1024  # one (8 sublane, 128 lane) f32 vreg's worth of batch elements


def _round_up(n, m):
    return ((n + m - 1) // m) * m


def _sigmoid(t):
    # Single EUP transcendental; exact formulation (no approx reciprocal).
    return 0.5 * jnp.tanh(0.5 * t) + 0.5


def _mlp_kernel(w1_ref, b1_ref, w2_ref, b2_ref, x_ref, o_ref):
    """Feature-major 6 -> 3 -> 1 MLP on one sublane+lane-dense batch tile.

    x_ref : (6, R, 128) VMEM  -- feature k at x_ref[k], batch dense in (R,128)
    w1_ref: (18,) SMEM         -- (3, 6) row-major flattened
    b1_ref: (3,)  SMEM
    w2_ref: (3,)  SMEM         -- (1, 3) flattened
    b2_ref: (1,)  SMEM
    o_ref : (R, 128) VMEM      -- dense output tile
    """
    # Load each input-feature plane once; reuse across the 3 hidden units.
    xrows = [x_ref[k] for k in range(6)]          # each (R, 128), fully dense

    y = None
    for j in range(3):                            # hidden units
        s = xrows[0] * w1_ref[j * 6]
        for k in range(1, 6):                     # remaining input features
            s = s + xrows[k] * w1_ref[j * 6 + k]  # VPU broadcast-FMA
        h = _sigmoid(s + b1_ref[j])
        term = h * w2_ref[j]
        y = term if y is None else y + term
    o_ref[...] = _sigmoid(y + b2_ref[0])


def _default_tile_b(B):
    """Pick a batch tile: multiple of 1024, >= ~4 grid steps on big batches,
    capped at 64K elems (~3.7 MiB double-buffered VMEM: safe on v5e's 16 MiB
    and v7x's 32 MiB scoped defaults)."""
    b_pad = _round_up(max(B, 1), _BLOCK)
    n_blocks = b_pad // _BLOCK
    blocks_per_tile = max(1, min(64, -(-n_blocks // 4)))
    return blocks_per_tile * _BLOCK


def net_forward(x, w1, b1, w2, b2, *, tile_b=None):
    """Forward pass of Net: Linear(6,3) -> sigmoid -> Linear(3,1) -> sigmoid.

    x : (B, 6);  w1: (3, 6);  b1: (3,);  w2: (1, 3);  b2: (1,)
    returns (B, 1) float32.
    """
    B = x.shape[0]
    if tile_b is None:
        tile_b = _default_tile_b(B)
    assert tile_b % _BLOCK == 0
    b_pad = _round_up(max(B, 1), tile_b)
    n_rows = b_pad // 128
    tile_rows = tile_b // 128            # multiple of 8 -> dense (8,128) tiles

    # Pad only the batch tail, then go feature-major + (rows, 128)-dense.
    xf = x.astype(jnp.float32)
    pad = b_pad - B
    if pad:
        xf = jnp.concatenate([xf, jnp.zeros((pad, 6), jnp.float32)], axis=0)
    x_t = xf.T.reshape(6, n_rows, 128)   # (6, n_rows, 128)

    w1_flat = w1.reshape(-1).astype(jnp.float32)   # (18,)
    b1_flat = b1.reshape(-1).astype(jnp.float32)   # (3,)
    w2_flat = w2.reshape(-1).astype(jnp.float32)   # (3,)
    b2_flat = b2.reshape(-1).astype(jnp.float32)   # (1,)

    smem = pl.BlockSpec(memory_space=pltpu.MemorySpace.SMEM)

    cost = pl.CostEstimate(
        flops=42 * b_pad,            # 21 FMAs / element
        transcendentals=4 * b_pad,   # tanh in both sigmoids
        bytes_accessed=28 * b_pad,   # 24 B in + 4 B out per element
    )

    out = pl.pallas_call(
        _mlp_kernel,
        out_shape=jax.ShapeDtypeStruct((n_rows, 128), jnp.float32),
        grid=(b_pad // tile_b,),
        in_specs=[
            smem,                                               # w1 (resident)
            smem,                                               # b1
            smem,                                               # w2
            smem,                                               # b2
            pl.BlockSpec((6, tile_rows, 128), lambda i: (0, i, 0)),  # x tile
        ],
        out_specs=pl.BlockSpec((tile_rows, 128), lambda i: (i, 0)),
        compiler_params=pltpu.CompilerParams(
            dimension_semantics=("parallel",)),                 # megacore
        cost_estimate=cost,
    )(w1_flat, b1_flat, w2_flat, b2_flat, x_t)

    return out.reshape(b_pad)[:B].reshape(B, 1)


def init_params(key):
    """Deterministic PyTorch-style (uniform +-1/sqrt(fan_in)) init."""
    k1, k2, k3, k4 = jax.random.split(key, 4)
    bound1 = 1.0 / jnp.sqrt(6.0)
    bound2 = 1.0 / jnp.sqrt(3.0)
    w1 = jax.random.uniform(k1, (3, 6), jnp.float32, -bound1, bound1)
    b1 = jax.random.uniform(k2, (3,), jnp.float32, -bound1, bound1)
    w2 = jax.random.uniform(k3, (1, 3), jnp.float32, -bound2, bound2)
    b2 = jax.random.uniform(k4, (1,), jnp.float32, -bound2, bound2)
    return w1, b1, w2, b2


if __name__ == "__main__":
    key = jax.random.PRNGKey(0)
    k_x, k_p, k_x2, k_x3 = jax.random.split(key, 4)

    w1, b1, w2, b2 = init_params(k_p)

    def ref_fn(x):
        return jax.nn.sigmoid(jax.nn.sigmoid(x @ w1.T + b1) @ w2.T + b2)

    # Small batch (single grid step, padded up to one dense 1024-elem tile).
    B = 8
    x = jax.random.normal(k_x, (B, 6), dtype=jnp.float32)
    out = jax.block_until_ready(net_forward(x, w1, b1, w2, b2))
    assert out.shape == (B, 1)
    assert jnp.allclose(out, ref_fn(x), atol=2e-3, rtol=2e-3)

    # Ragged batch, single default tile (exercises tail padding).
    B2 = 300
    x2 = jax.random.normal(k_x2, (B2, 6), dtype=jnp.float32)
    out2 = jax.block_until_ready(net_forward(x2, w1, b1, w2, b2))
    assert out2.shape == (B2, 1)
    assert jnp.allclose(out2, ref_fn(x2), atol=2e-3, rtol=2e-3)

    # Ragged batch across several grid steps (exercises tiling + pipelining).
    B3 = 2500
    x3 = jax.random.normal(k_x3, (B3, 6), dtype=jnp.float32)
    out3 = jax.block_until_ready(net_forward(x3, w1, b1, w2, b2, tile_b=1024))
    assert out3.shape == (B3, 1)
    assert jnp.allclose(out3, ref_fn(x3), atol=2e-3, rtol=2e-3)

    print("KERNEL_OK")
</pallas_src>

<mosaic_0001>
module attributes {stable_mosaic.version = 11 : i64} {
  func.func @_mlp_kernel(%arg0: i32, %arg1: memref<18xf32, #tpu.memory_space<smem>>, %arg2: memref<3xf32, #tpu.memory_space<smem>>, %arg3: memref<3xf32, #tpu.memory_space<smem>>, %arg4: memref<1xf32, #tpu.memory_space<smem>>, %arg5: memref<6x8x128xf32, #tpu.memory_space<vmem>>, %arg6: memref<8x128xf32, #tpu.memory_space<vmem>>) attributes {dimension_semantics = [#tpu.dimension_semantics<parallel>], iteration_bounds = array<i64: 1>, scalar_prefetch = 0 : i64, scratch_operands = 0 : i64, tpu.core_type = #tpu.core_type<tc>, window_params = [{transform_indices = @transform_0, window_bounds = array<i64: 18>}, {transform_indices = @transform_1, window_bounds = array<i64: 3>}, {transform_indices = @transform_2, window_bounds = array<i64: 3>}, {transform_indices = @transform_3, window_bounds = array<i64: 1>}, {transform_indices = @transform_4, window_bounds = array<i64: 6, 8, 128>}, {transform_indices = @transform_5, window_bounds = array<i64: 8, 128>}]} {
    %c0 = arith.constant 0 : index
    %c0_0 = arith.constant 0 : index
    %c0_1 = arith.constant 0 : index
    %0 = vector.load %arg5[%c0, %c0_0, %c0_1] : memref<6x8x128xf32, #tpu.memory_space<vmem>>, vector<1x8x128xf32>
    %1 = vector.shape_cast %0 : vector<1x8x128xf32> to vector<8x128xf32>
    %c1 = arith.constant 1 : index
    %c0_2 = arith.constant 0 : index
    %c0_3 = arith.constant 0 : index
    %2 = vector.load %arg5[%c1, %c0_2, %c0_3] : memref<6x8x128xf32, #tpu.memory_space<vmem>>, vector<1x8x128xf32>
    %3 = vector.shape_cast %2 : vector<1x8x128xf32> to vector<8x128xf32>
    %c2 = arith.constant 2 : index
    %c0_4 = arith.constant 0 : index
    %c0_5 = arith.constant 0 : index
    %4 = vector.load %arg5[%c2, %c0_4, %c0_5] : memref<6x8x128xf32, #tpu.memory_space<vmem>>, vector<1x8x128xf32>
    %5 = vector.shape_cast %4 : vector<1x8x128xf32> to vector<8x128xf32>
    %c3 = arith.constant 3 : index
    %c0_6 = arith.constant 0 : index
    %c0_7 = arith.constant 0 : index
    %6 = vector.load %arg5[%c3, %c0_6, %c0_7] : memref<6x8x128xf32, #tpu.memory_space<vmem>>, vector<1x8x128xf32>
    %7 = vector.shape_cast %6 : vector<1x8x128xf32> to vector<8x128xf32>
    %c4 = arith.constant 4 : index
    %c0_8 = arith.constant 0 : index
    %c0_9 = arith.constant 0 : index
    %8 = vector.load %arg5[%c4, %c0_8, %c0_9] : memref<6x8x128xf32, #tpu.memory_space<vmem>>, vector<1x8x128xf32>
    %9 = vector.shape_cast %8 : vector<1x8x128xf32> to vector<8x128xf32>
    %c5 = arith.constant 5 : index
    %c0_10 = arith.constant 0 : index
    %c0_11 = arith.constant 0 : index
    %10 = vector.load %arg5[%c5, %c0_10, %c0_11] : memref<6x8x128xf32, #tpu.memory_space<vmem>>, vector<1x8x128xf32>
    %11 = vector.shape_cast %10 : vector<1x8x128xf32> to vector<8x128xf32>
    %c0_12 = arith.constant 0 : index
    %12 = memref.load %arg1[%c0_12] : memref<18xf32, #tpu.memory_space<smem>>
    %13 = vector.broadcast %12 : f32 to vector<8x128xf32>
    %14 = arith.mulf %1, %13 : vector<8x128xf32>
    %c1_13 = arith.constant 1 : index
    %15 = memref.load %arg1[%c1_13] : memref<18xf32, #tpu.memory_space<smem>>
    %16 = vector.broadcast %15 : f32 to vector<8x128xf32>
    %17 = arith.mulf %3, %16 : vector<8x128xf32>
    %18 = arith.addf %14, %17 : vector<8x128xf32>
    %c2_14 = arith.constant 2 : index
    %19 = memref.load %arg1[%c2_14] : memref<18xf32, #tpu.memory_space<smem>>
    %20 = vector.broadcast %19 : f32 to vector<8x128xf32>
    %21 = arith.mulf %5, %20 : vector<8x128xf32>
    %22 = arith.addf %18, %21 : vector<8x128xf32>
    %c3_15 = arith.constant 3 : index
    %23 = memref.load %arg1[%c3_15] : memref<18xf32, #tpu.memory_space<smem>>
    %24 = vector.broadcast %23 : f32 to vector<8x128xf32>
    %25 = arith.mulf %7, %24 : vector<8x128xf32>
    %26 = arith.addf %22, %25 : vector<8x128xf32>
    %c4_16 = arith.constant 4 : index
    %27 = memref.load %arg1[%c4_16] : memref<18xf32, #tpu.memory_space<smem>>
    %28 = vector.broadcast %27 : f32 to vector<8x128xf32>
    %29 = arith.mulf %9, %28 : vector<8x128xf32>
    %30 = arith.addf %26, %29 : vector<8x128xf32>
    %c5_17 = arith.constant 5 : index
    %31 = memref.load %arg1[%c5_17] : memref<18xf32, #tpu.memory_space<smem>>
    %32 = vector.broadcast %31 : f32 to vector<8x128xf32>
    %33 = arith.mulf %11, %32 : vector<8x128xf32>
    %34 = arith.addf %30, %33 : vector<8x128xf32>
    %c0_18 = arith.constant 0 : index
    %35 = memref.load %arg2[%c0_18] : memref<3xf32, #tpu.memory_space<smem>>
    %36 = vector.broadcast %35 : f32 to vector<8x128xf32>
    %37 = arith.addf %34, %36 : vector<8x128xf32>
    %cst = arith.constant 5.000000e-01 : f32
    %38 = vector.broadcast %cst : f32 to vector<8x128xf32>
    %39 = arith.mulf %38, %37 : vector<8x128xf32>
    %40 = math.tanh %39 : vector<8x128xf32>
    %cst_19 = arith.constant 5.000000e-01 : f32
    %41 = vector.broadcast %cst_19 : f32 to vector<8x128xf32>
    %42 = arith.mulf %41, %40 : vector<8x128xf32>
    %cst_20 = arith.constant 5.000000e-01 : f32
    %43 = vector.broadcast %cst_20 : f32 to vector<8x128xf32>
    %44 = arith.addf %42, %43 : vector<8x128xf32>
    %c0_21 = arith.constant 0 : index
    %45 = memref.load %arg3[%c0_21] : memref<3xf32, #tpu.memory_space<smem>>
    %46 = vector.broadcast %45 : f32 to vector<8x128xf32>
    %47 = arith.mulf %44, %46 : vector<8x128xf32>
    %c6 = arith.constant 6 : index
    %48 = memref.load %arg1[%c6] : memref<18xf32, #tpu.memory_space<smem>>
    %49 = vector.broadcast %48 : f32 to vector<8x128xf32>
    %50 = arith.mulf %1, %49 : vector<8x128xf32>
    %c7 = arith.constant 7 : index
    %51 = memref.load %arg1[%c7] : memref<18xf32, #tpu.memory_space<smem>>
    %52 = vector.broadcast %51 : f32 to vector<8x128xf32>
    %53 = arith.mulf %3, %52 : vector<8x128xf32>
    %54 = arith.addf %50, %53 : vector<8x128xf32>
    %c8 = arith.constant 8 : index
    %55 = memref.load %arg1[%c8] : memref<18xf32, #tpu.memory_space<smem>>
    %56 = vector.broadcast %55 : f32 to vector<8x128xf32>
    %57 = arith.mulf %5, %56 : vector<8x128xf32>
    %58 = arith.addf %54, %57 : vector<8x128xf32>
    %c9 = arith.constant 9 : index
    %59 = memref.load %arg1[%c9] : memref<18xf32, #tpu.memory_space<smem>>
    %60 = vector.broadcast %59 : f32 to vector<8x128xf32>
    %61 = arith.mulf %7, %60 : vector<8x128xf32>
    %62 = arith.addf %58, %61 : vector<8x128xf32>
    %c10 = arith.constant 10 : index
    %63 = memref.load %arg1[%c10] : memref<18xf32, #tpu.memory_space<smem>>
    %64 = vector.broadcast %63 : f32 to vector<8x128xf32>
    %65 = arith.mulf %9, %64 : vector<8x128xf32>
    %66 = arith.addf %62, %65 : vector<8x128xf32>
    %c11 = arith.constant 11 : index
    %67 = memref.load %arg1[%c11] : memref<18xf32, #tpu.memory_space<smem>>
    %68 = vector.broadcast %67 : f32 to vector<8x128xf32>
    %69 = arith.mulf %11, %68 : vector<8x128xf32>
    %70 = arith.addf %66, %69 : vector<8x128xf32>
    %c1_22 = arith.constant 1 : index
    %71 = memref.load %arg2[%c1_22] : memref<3xf32, #tpu.memory_space<smem>>
    %72 = vector.broadcast %71 : f32 to vector<8x128xf32>
    %73 = arith.addf %70, %72 : vector<8x128xf32>
    %cst_23 = arith.constant 5.000000e-01 : f32
    %74 = vector.broadcast %cst_23 : f32 to vector<8x128xf32>
    %75 = arith.mulf %74, %73 : vector<8x128xf32>
    %76 = math.tanh %75 : vector<8x128xf32>
    %cst_24 = arith.constant 5.000000e-01 : f32
    %77 = vector.broadcast %cst_24 : f32 to vector<8x128xf32>
    %78 = arith.mulf %77, %76 : vector<8x128xf32>
    %cst_25 = arith.constant 5.000000e-01 : f32
    %79 = vector.broadcast %cst_25 : f32 to vector<8x128xf32>
    %80 = arith.addf %78, %79 : vector<8x128xf32>
    %c1_26 = arith.constant 1 : index
    %81 = memref.load %arg3[%c1_26] : memref<3xf32, #tpu.memory_space<smem>>
    %82 = vector.broadcast %81 : f32 to vector<8x128xf32>
    %83 = arith.mulf %80, %82 : vector<8x128xf32>
    %84 = arith.addf %47, %83 : vector<8x128xf32>
    %c12 = arith.constant 12 : index
    %85 = memref.load %arg1[%c12] : memref<18xf32, #tpu.memory_space<smem>>
    %86 = vector.broadcast %85 : f32 to vector<8x128xf32>
    %87 = arith.mulf %1, %86 : vector<8x128xf32>
    %c13 = arith.constant 13 : index
    %88 = memref.load %arg1[%c13] : memref<18xf32, #tpu.memory_space<smem>>
    %89 = vector.broadcast %88 : f32 to vector<8x128xf32>
    %90 = arith.mulf %3, %89 : vector<8x128xf32>
    %91 = arith.addf %87, %90 : vector<8x128xf32>
    %c14 = arith.constant 14 : index
    %92 = memref.load %arg1[%c14] : memref<18xf32, #tpu.memory_space<smem>>
    %93 = vector.broadcast %92 : f32 to vector<8x128xf32>
    %94 = arith.mulf %5, %93 : vector<8x128xf32>
    %95 = arith.addf %91, %94 : vector<8x128xf32>
    %c15 = arith.constant 15 : index
    %96 = memref.load %arg1[%c15] : memref<18xf32, #tpu.memory_space<smem>>
    %97 = vector.broadcast %96 : f32 to vector<8x128xf32>
    %98 = arith.mulf %7, %97 : vector<8x128xf32>
    %99 = arith.addf %95, %98 : vector<8x128xf32>
    %c16 = arith.constant 16 : index
    %100 = memref.load %arg1[%c16] : memref<18xf32, #tpu.memory_space<smem>>
    %101 = vector.broadcast %100 : f32 to vector<8x128xf32>
    %102 = arith.mulf %9, %101 : vector<8x128xf32>
    %103 = arith.addf %99, %102 : vector<8x128xf32>
    %c17 = arith.constant 17 : index
    %104 = memref.load %arg1[%c17] : memref<18xf32, #tpu.memory_space<smem>>
    %105 = vector.broadcast %104 : f32 to vector<8x128xf32>
    %106 = arith.mulf %11, %105 : vector<8x128xf32>
    %107 = arith.addf %103, %106 : vector<8x128xf32>
    %c2_27 = arith.constant 2 : index
    %108 = memref.load %arg2[%c2_27] : memref<3xf32, #tpu.memory_space<smem>>
    %109 = vector.broadcast %108 : f32 to vector<8x128xf32>
    %110 = arith.addf %107, %109 : vector<8x128xf32>
    %cst_28 = arith.constant 5.000000e-01 : f32
    %111 = vector.broadcast %cst_28 : f32 to vector<8x128xf32>
    %112 = arith.mulf %111, %110 : vector<8x128xf32>
    %113 = math.tanh %112 : vector<8x128xf32>
    %cst_29 = arith.constant 5.000000e-01 : f32
    %114 = vector.broadcast %cst_29 : f32 to vector<8x128xf32>
    %115 = arith.mulf %114, %113 : vector<8x128xf32>
    %cst_30 = arith.constant 5.000000e-01 : f32
    %116 = vector.broadcast %cst_30 : f32 to vector<8x128xf32>
    %117 = arith.addf %115, %116 : vector<8x128xf32>
    %c2_31 = arith.constant 2 : index
    %118 = memref.load %arg3[%c2_31] : memref<3xf32, #tpu.memory_space<smem>>
    %119 = vector.broadcast %118 : f32 to vector<8x128xf32>
    %120 = arith.mulf %117, %119 : vector<8x128xf32>
    %121 = arith.addf %84, %120 : vector<8x128xf32>
    %c0_32 = arith.constant 0 : index
    %122 = memref.load %arg4[%c0_32] : memref<1xf32, #tpu.memory_space<smem>>
    %123 = vector.broadcast %122 : f32 to vector<8x128xf32>
    %124 = arith.addf %121, %123 : vector<8x128xf32>
    %cst_33 = arith.constant 5.000000e-01 : f32
    %125 = vector.broadcast %cst_33 : f32 to vector<8x128xf32>
    %126 = arith.mulf %125, %124 : vector<8x128xf32>
    %127 = math.tanh %126 : vector<8x128xf32>
    %cst_34 = arith.constant 5.000000e-01 : f32
    %128 = vector.broadcast %cst_34 : f32 to vector<8x128xf32>
    %129 = arith.mulf %128, %127 : vector<8x128xf32>
    %cst_35 = arith.constant 5.000000e-01 : f32
    %130 = vector.broadcast %cst_35 : f32 to vector<8x128xf32>
    %131 = arith.addf %129, %130 : vector<8x128xf32>
    %c0_36 = arith.constant 0 : index
    %c0_37 = arith.constant 0 : index
    %132 = vector.load %arg6[%c0_36, %c0_37] : memref<8x128xf32, #tpu.memory_space<vmem>>, vector<8x128xf32>
    tpu.vector_store %arg6[%c0_36, %c0_37], %131 {strides = array<i32>} : memref<8x128xf32, #tpu.memory_space<vmem>>, vector<8x128xf32>,
    return
  }
  func.func @transform_0(%arg0: i32) -> i32 {
    %c0_i32 = arith.constant 0 : i32
    %c0_i32_0 = arith.constant 0 : i32
    return %c0_i32 : i32
  }
  func.func @transform_1(%arg0: i32) -> i32 {
    %c0_i32 = arith.constant 0 : i32
    %c0_i32_0 = arith.constant 0 : i32
    return %c0_i32 : i32
  }
  func.func @transform_2(%arg0: i32) -> i32 {
    %c0_i32 = arith.constant 0 : i32
    %c0_i32_0 = arith.constant 0 : i32
    return %c0_i32 : i32
  }
  func.func @transform_3(%arg0: i32) -> i32 {
    %c0_i32 = arith.constant 0 : i32
    %c0_i32_0 = arith.constant 0 : i32
    return %c0_i32 : i32
  }
  func.func @transform_4(%arg0: i32) -> (i32, i32, i32) {
    %c0_i32 = arith.constant 0 : i32
    %c0_i32_0 = arith.constant 0 : i32
    %c0_i32_1 = arith.constant 0 : i32
    return %c0_i32, %arg0, %c0_i32_0 : i32, i32, i32
  }
  func.func @transform_5(%arg0: i32) -> (i32, i32) {
    %c0_i32 = arith.constant 0 : i32
    %c0_i32_0 = arith.constant 0 : i32
    return %arg0, %c0_i32 : i32, i32
  }
}

</mosaic_0001>

<bundles_post_ra>
// kernel: tpu_custom_call.1
= control target key start
LH: loop header
LB: loop body
LE: loop exit
PB: predicated region body
PF: predicated region fallthrough
CT: control target
= control target key end

     0   :  { %11 = vsyncpa [#allocation6], 0  ;;  %s395_s0 = inlined_call_operand.vmem [shape: f32[18], index: 0, kind: input, shape index: {}]   ;;  %s396_s1 = inlined_call_operand.vmem [shape: f32[3], index: 1, kind: input, shape index: {}]   ;;  %s397_s2 = inlined_call_operand.vmem [shape: f32[3], index: 2, kind: input, shape index: {}]   ;;  %s398_s3 = inlined_call_operand.<no memory space> [shape: f32[1], index: 3, kind: input, shape index: {}]   ;;  %s399_s4 = inlined_call_operand.hbm [shape: f32[6,8,128], index: 4, kind: input, shape index: {}]   ;;  %s400_s5 = inlined_call_operand.hbm [shape: f32[8,128], index: 5, kind: output, shape index: {}]  }
   0x1   :  { %12 = vsyncpa [#allocation8], 0 }
   0x2   :  { %13 = vsyncpa [#allocation4], 0  ;;  %s31_s20 = sshll.u32 %s396_s1, 4  ;;  %s32_s20 = int_to_ptr.vmem [resolvable:$true] %s31_s20 }
   0x3   :  { %14 = vsyncpa [#allocation5], 0  ;;  %s21_s23 = sshll.u32 %s395_s0, 4  ;;  %s245_s24 = scalar_lea.vmem %s32_s20, 16  ;;  %s22_s23 = int_to_ptr.vmem [resolvable:$true] %s21_s23 }
   0x4   :  { %p246_p0 = scmp.ne.s32.totalorder %s32_s20, %s245_s24  ;;  %p250_p1 = scmp.lt.s32.totalorder %s32_s20, %s32_s20 }
   0x5   :  { %p251_p2 = scmp.lt.s32.totalorder %s245_s24, %s245_s24 }
   0x7   :  { %p252_p3 = por %p251_p2, %p250_p1 }
   0x9   :  { %p253_p4 = pnand %p252_p3, %p246_p0 }
   0xb   :  { %256 = shalt.err (!%p253_p4)
}
   0xc   :  { %s329_s25 = smov [#allocation7]   ;;  %s257_s26 = scalar_lea.vmem %s22_s23, 16 }
   0xd   :  { %34 = dma.vmem_to_smem %s32_s20, 16, %s329_s25, [#allocation8]  }
   0xe   :  { %p258_p5 = scmp.ne.s32.totalorder %s22_s23, %s257_s26  ;;  %p262_p6 = scmp.lt.s32.totalorder %s22_s23, %s22_s23 }
   0xf   :  { %p263_p7 = scmp.lt.s32.totalorder %s257_s26, %s257_s26 }
  0x11   :  { %p264_p8 = por %p263_p7, %p262_p6 }
  0x13   :  { %p265_p9 = pnand %p264_p8, %p258_p5 }
  0x15   :  { %268 = shalt.err (!%p265_p9)
}
  0x16   :  { %s330_s1 = smov [#allocation3]   ;;  %s41_s28 = sshll.u32 %s397_s2, 4  ;;  %s42_s28 = int_to_ptr.vmem [resolvable:$true] %s41_s28 }
  0x17   :  { %24 = dma.vmem_to_smem %s22_s23, 16, %s330_s1, [#allocation6]  }
  0x18   :  { %s269_s29 = scalar_lea.vmem %s42_s28, 16  ;;  %p274_p11 = scmp.lt.s32.totalorder %s42_s28, %s42_s28 }
  0x19   :  { %p270_p10 = scmp.ne.s32.totalorder %s42_s28, %s269_s29  ;;  %p275_p12 = scmp.lt.s32.totalorder %s269_s29, %s269_s29 }
  0x1b   :  { %p276_p13 = por %p275_p12, %p274_p11 }
  0x1d   :  { %p277_p0 = pnand %p276_p13, %p270_p10 }
  0x1f   :  { %280 = shalt.err (!%p277_p0)
}
  0x20   :  { %s331_s30 = smov [#allocation9]   ;;  %s332_s6 = smov [#allocation10]  }
  0x21   :  { %44 = dma.vmem_to_smem %s42_s28, 16, %s331_s30, [#allocation8]  }
  0x22   :  { %s52_s7 = sshll.u32 %s332_s6, 4  ;;  %s53_s7 = int_to_ptr.vmem [resolvable:$true] %s52_s7 }
  0x23   :  { %s289_s8 = scalar_lea.vmem %s53_s7, 768  ;;  %p294_p2 = scmp.lt.s32.totalorder %s53_s7, %s53_s7 }
  0x24   :  { %p290_p1 = scmp.ne.s32.totalorder %s53_s7, %s289_s8  ;;  %p295_p3 = scmp.lt.s32.totalorder %s289_s8, %s289_s8 }
  0x26   :  { %p296_p4 = por %p295_p3, %p294_p2 }
  0x28   :  { %p297_p5 = pnand %p296_p4, %p290_p1 }
  0x2a   :  { %300 = shalt.err (!%p297_p5)
}
  0x2b   :  { %s333_s2 = smov 128   ;;  %s334_s9 = smov 8  }
  0x2c   :  { %58 = dma.hbm_to_vmem [thread:$0]  %s399_s4, 768, %s53_s7, [#allocation4], %s333_s2, %s333_s2, %s334_s9  }
  0x2d   :  { %321 = dma.done.wait [#allocation6], 16  }
  0x2e   :  { %322 = vsyncadd [#allocation6], 4294967280 }
  0x2f   :  { %323 = dma.done.wait [#allocation8], 32  }
  0x30   :  { %324 = vsyncadd [#allocation8], 4294967264 }
  0x31   :  { %325 = dma.done.wait [#allocation4], 768  }
  0x32   :  { %326 = vsyncadd [#allocation4], 4294966528 }
  0x33   :  { %71 = sfence }
  0x34   :  { %s83_s12 = sld [smem:[#allocation3]]  ;;  %v72_v0 = vld [vmem:[#allocation10] sm:$0xff]  ;;  %v74_v1 = vld [vmem:[#allocation10 + $0x8] sm:$0xff]  ;;  %v76_v2 = vld [vmem:[#allocation10 + $0x10] sm:$0xff]  ;;  %s335_s9 = smov [#allocation11]  }
  0x35   :  { %s209_s13 = sld [smem:[#allocation3 + $0x1]]  ;;  %v378_v4 = vld [vmem:[#allocation10 + $0x18] sm:$0xff]  ;;  %v80_v9 = vld [vmem:[#allocation10 + $0x20] sm:$0xff]  ;;  %v82_v15 = vld [vmem:[#allocation10 + $0x28] sm:$0xff]  ;;  %s198_s10 = sshll.u32 %s335_s9, 4  ;;  %s199_s10 = int_to_ptr.vmem [resolvable:$true] %s198_s10 }
  0x36   :  { %s210_s14 = sld [smem:[#allocation3 + $0x2]]  ;;  %s301_s11 = scalar_lea.vmem %s199_s10, 128 }
  0x37   :  { %s211_s15 = sld [smem:[#allocation3 + $0x3]]  ;;  %p302_p6 = scmp.ne.s32.totalorder %s199_s10, %s301_s11 }
  0x38   :  { %s212_s16 = sld [smem:[#allocation3 + $0x4]]  ;;  %p306_p7 = scmp.lt.s32.totalorder %s199_s10, %s199_s10 }
  0x39   :  { %s213_s17 = sld [smem:[#allocation3 + $0x5]]  ;;  %p307_p8 = scmp.lt.s32.totalorder %s301_s11, %s301_s11 }
  0x3a   :  { %v84_v3 = vstv %s83_s12  ;;  %s380_s4 = sld [smem:[#allocation7]] }
  0x3b   :  { %v85_v5 = vmul.f32 %v84_v3, %v72_v0  ;;  %v87_v6 = vstv %s209_s13  ;;  %s214_s18 = sld [smem:[#allocation3 + $0x6]]  ;;  %p308_p9 = por %p307_p8, %p306_p7 }
  0x3c   :  { %v88_v7 = vmul.f32 %v87_v6, %v74_v1  ;;  %v91_v8 = vstv %s210_s14  ;;  %s215_s19 = sld [smem:[#allocation3 + $0x7]] }
  0x3d   :  { %v92_v10 = vmul.f32 %v91_v8, %v76_v2  ;;  %v95_v11 = vstv %s211_s15  ;;  %s216_s20 = sld [smem:[#allocation3 + $0x8]]  ;;  %p309_p10 = pnand %p308_p9, %p302_p6 }
  0x3e   :  { %v89_v12 = vadd.f32 %v88_v7, %v85_v5  ;;  %v96_v13 = vmul.f32 %v95_v11, %v378_v4  ;;  %v99_v14 = vstv %s212_s16  ;;  %s217_s21 = sld [smem:[#allocation3 + $0x9]] }
  0x3f   :  { %v103_v16 = vstv %s213_s17  ;;  %v100_v18 = vmul.f32 %v99_v14, %v80_v9  ;;  %s218_s22 = sld [smem:[#allocation3 + $0xa]] }
  0x40   :  { %v93_v17 = vadd.f32 %v92_v10, %v89_v12  ;;  %s219_s23 = sld [smem:[#allocation3 + $0xb]]  ;;  %v104_v20 = vmul.f32 %v103_v16, %v82_v15  ;;  %v107_v27 = vstv %s380_s4 }
  0x41   :  { %v117_v21 = vstv %s214_s18  ;;  %s383_s24 = sld [smem:[#allocation7 + $0x1]] }
  0x42   :  { %v97_v19 = vadd.f32 %v96_v13, %v93_v17  ;;  %v118_v22 = vmul.f32 %v117_v21, %v72_v0  ;;  %v120_v23 = vstv %s215_s19  ;;  %s222_s25 = sld [smem:[#allocation3 + $0xc]] }
  0x43   :  { %v121_v25 = vmul.f32 %v120_v23, %v74_v1  ;;  %v124_v26 = vstv %s216_s20  ;;  %s223_s26 = sld [smem:[#allocation3 + $0xd]] }
  0x44   :  { %v101_v24 = vadd.f32 %v100_v18, %v97_v19  ;;  %v125_v28 = vmul.f32 %v124_v26, %v76_v2  ;;  %v128_v29 = vstv %s217_s21  ;;  %s224_s1 = sld [smem:[#allocation3 + $0xe]]  ;;  %v185_v18 = vstv %s398_s3 }
  0x45   :  { %v122_v31 = vadd.f32 %v121_v25, %v118_v22  ;;  %v129_v32 = vmul.f32 %v128_v29, %v378_v4  ;;  %v132_v33 = vstv %s218_s22  ;;  %s225_s0 = sld [smem:[#allocation3 + $0xf]] }
  0x46   :  { %v105_v30 = vadd.f32 %v104_v20, %v101_v24  ;;  %v136_v34 = vstv %s219_s23  ;;  %v133_v37 = vmul.f32 %v132_v33, %v80_v9  ;;  %s226_s27 = sld [smem:[#allocation3 + $0x10]] }
  0x47   :  { %v126_v36 = vadd.f32 %v125_v28, %v122_v31  ;;  %s227_s28 = sld [smem:[#allocation3 + $0x11]]  ;;  %v137_v39 = vmul.f32 %v136_v34, %v82_v15  ;;  %v140_v47 = vstv %s383_s24 }
  0x48   :  { %v108_v35 = vadd.f32 %v107_v27, %v105_v30  ;;  %v151_v40 = vstv %s222_s25  ;;  %s228_s29 = sld [smem:[#allocation7 + $0x2]] }
  0x49   :  { %v130_v38 = vadd.f32 %v129_v32, %v126_v36  ;;  %v152_v41 = vmul.f32 %v151_v40, %v72_v0  ;;  %v154_v42 = vstv %s223_s26  ;;  %s113_s30 = sld [smem:[#allocation9]] }
  0x4a   :  { %v109_v43 = vmul.f32 0.5, %v108_v35  ;;  %v155_v45 = vmul.f32 %v154_v42, %v74_v1  ;;  %v158_v46 = vstv %s224_s1  ;;  %s221_s6 = sld [smem:[#allocation9 + $0x1]] }
  0x4b   :  { %v134_v44 = vadd.f32 %v133_v37, %v130_v38  ;;  %v159_v48 = vmul.f32 %v158_v46, %v76_v2  ;;  %v162_v49 = vstv %s225_s0  ;;  %s229_s7 = sld [smem:[#allocation9 + $0x2]] }
  0x4c   :  { %v156_v51 = vadd.f32 %v155_v45, %v152_v41  ;;  %v163_v52 = vmul.f32 %v162_v49, %v378_v4  ;;  %v166_v53 = vstv %s226_s27  ;;  %237 = vtanh.f32 %v109_v43 }
  0x4d   :  { %v138_v50 = vadd.f32 %v137_v39, %v134_v44  ;;  %v170_v54 = vstv %s227_s28  ;;  %v167_v57 = vmul.f32 %v166_v53, %v80_v9 }
  0x4e   :  { %v160_v56 = vadd.f32 %v159_v48, %v156_v51  ;;  %v171_v60 = vmul.f32 %v170_v54, %v82_v15  ;;  %v174_v62 = vstv %s228_s29 }
  0x4f   :  { %v141_v55 = vadd.f32 %v140_v47, %v138_v50  ;;  %v114_v8 = vstv %s113_s30 }
  0x50   :  { %v164_v59 = vadd.f32 %v163_v52, %v160_v56  ;;  %v147_v9 = vstv %s221_s6 }
  0x51   :  { %v142_v58 = vmul.f32 0.5, %v141_v55  ;;  %v181_v14 = vstv %s229_s7 }
  0x52   :  { %v168_v61 = vadd.f32 %v167_v57, %v164_v59 }
  0x53   :  { %239 = vtanh.f32 %v142_v58 }
  0x54   :  { %v172_v63 = vadd.f32 %v171_v60, %v168_v61 }
  0x56   :  { %v175_v0 = vadd.f32 %v174_v62, %v172_v63 }
  0x58   :  { %v176_v1 = vmul.f32 0.5, %v175_v0 }
  0x59   :  { %v238_v2 = vpop.eup %237 }
  0x5a   :  { %241 = vtanh.f32 %v176_v1  ;;  %v111_v3 = vmul.f32 0.5, %v238_v2 }
  0x5c   :  { %v112_v6 = vadd.f32 0.5, %v111_v3 }
  0x5e   :  { %v115_v10 = vmul.f32 %v114_v8, %v112_v6 }
  0x60   :  { %v240_v4 = vpop.eup %239 }
  0x61   :  { %v144_v5 = vmul.f32 0.5, %v240_v4 }
  0x63   :  { %v145_v7 = vadd.f32 0.5, %v144_v5 }
  0x65   :  { %v148_v11 = vmul.f32 %v147_v9, %v145_v7 }
  0x67   :  { %v242_v12 = vpop.eup %241  ;;  %v149_v15 = vadd.f32 %v148_v11, %v115_v10 }
  0x68   :  { %v178_v13 = vmul.f32 0.5, %v242_v12 }
  0x6a   :  { %v179_v16 = vadd.f32 0.5, %v178_v13 }
  0x6c   :  { %v182_v17 = vmul.f32 %v181_v14, %v179_v16 }
  0x6e   :  { %v183_v19 = vadd.f32 %v182_v17, %v149_v15 }
  0x70   :  { %v186_v20 = vadd.f32 %v185_v18, %v183_v19 }
  0x72   :  { %v187_v21 = vmul.f32 0.5, %v186_v20 }
  0x74   :  { %243 = vtanh.f32 %v187_v21 }
  0x81   :  { %v244_v22 = vpop.eup %243 }
  0x82   :  { %v189_v23 = vmul.f32 0.5, %v244_v22 }
  0x84   :  { %v190_v24 = vadd.f32 0.5, %v189_v23 }
  0x86   :  { %191 = vst [vmem:[#allocation11] sm:$0xff] %v190_v24 }
  0x87   :  { %312 = shalt.err (!%p309_p10)
}
  0x88   :  { %201 = dma.vmem_to_hbm [thread:$0]  %s199_s10, 128, %s400_s5, [#allocation5]  }
  0x89   :  { %327 = dma.done.wait [#allocation5], 128  }
  0x8a   :  { %328 = vsyncadd [#allocation5], 4294967168 }
  0x8b   :  { %205 = vsyncpa [#allocation4], 1 }
  0x8c   :  { %206 = vsyncpa [#allocation5], 1 }
  0x8d   :  { %207 = vsyncpa [#allocation6], 1 }
  0x8e   :  { %208 = vsyncpa [#allocation8], 1 }

</bundles_post_ra>
